<compile_context>
chip_gen: v7x
topology: tpu7x:2x2x1
jax: 0.10.0
libtpu: 0.0.40
codegen_flags: <defaults>
</compile_context>

<pallas_src>
import functools

import jax
import jax.numpy as jnp
from jax.experimental import pallas as pl
from jax.experimental.pallas import tpu as pltpu

HIDDEN = 256          # feature width
STREAM = 128          # per-stream hidden width
N_PAD = 128           # lane-padded width of the fused final matmul / output


def _round_up(x, m):
    return ((x + m - 1) // m) * m


def dueling_dqn_kernel(x_ref, w1_ref, wcat_ref, w2_ref, bias_ref, out_ref):
    # Biases / elementwise math stay f32; only the MXU operands are bf16.
    b1 = bias_ref[0:1, :]                             # (1, 256)
    bcat = bias_ref[1:2, :]                           # (1, 256)
    b2 = bias_ref[2:3, :N_PAD]                        # (1, 128)

    # Shared feature layer: Linear(state_dim, 256) + ReLU
    x = x_ref[...].astype(jnp.bfloat16)               # (Bt, state_dim)
    h = jnp.dot(x, w1_ref[...], preferred_element_type=jnp.float32) + b1
    h = jnp.maximum(h, 0.0)                           # (Bt, 256) f32

    # Fused stream layer 1: [value_hidden | advantage_hidden] in one matmul.
    hcat = jnp.dot(h.astype(jnp.bfloat16), wcat_ref[...],
                   preferred_element_type=jnp.float32) + bcat
    hcat = jnp.maximum(hcat, 0.0)                     # (Bt, 256) f32

    # Fused stream layer 2 (block-diagonal, lane-padded):
    #   cols 0..A-1 -> advantage, col A -> value, cols > A -> zeros.
    out = jnp.dot(hcat.astype(jnp.bfloat16), w2_ref[...],
                  preferred_element_type=jnp.float32) + b2
    out_ref[...] = out                                # (Bt, 128) lane-dense


def pack_params(params, action_dim):
    """Fuse / pad the PyTorch-layout params for the kernel (done once)."""
    (w1, b1, wv1, bv1, wv2, bv2, wa1, ba1, wa2, ba2) = params
    assert action_dim + 1 <= N_PAD, "action_dim must fit in the padded lane block"

    # Layer-1 stream fusion: cols 0..127 = value stream, 128..255 = advantage.
    wcat = jnp.concatenate([wv1, wa1], axis=1)                      # (256, 256)
    bcat = jnp.concatenate([bv1, ba1], axis=1)                      # (1, 256)

    # Layer-2 block-diagonal fusion, lane-padded to 128:
    #   w2[128:256, 0:A] = Wa2 (advantage cols), w2[0:128, A] = Wv2 (value col)
    w2 = jnp.zeros((2 * STREAM, N_PAD), jnp.float32)
    w2 = w2.at[STREAM:, 0:action_dim].set(wa2)
    w2 = w2.at[:STREAM, action_dim].set(wv2[:, 0])

    b2 = jnp.zeros((1, N_PAD), jnp.float32)
    b2 = b2.at[0, 0:action_dim].set(ba2[0])
    b2 = b2.at[0, action_dim].set(bv2[0, 0])

    # One packed f32 bias slab -> a single small DMA instead of three.
    biases = jnp.zeros((3, HIDDEN), jnp.float32)
    biases = biases.at[0].set(b1[0])
    biases = biases.at[1].set(bcat[0])
    biases = biases.at[2, :N_PAD].set(b2[0])

    # bf16 weights: native MXU operand dtype, halves weight DMA.
    # TODO(synk): on v7x consider fp8 weight storage (v7x MXU has fp8, no int8).
    return (w1.astype(jnp.bfloat16),
            wcat.astype(jnp.bfloat16),
            w2.astype(jnp.bfloat16),
            biases)


def dueling_dqn_forward(x, packed, action_dim, *, block_b=256):
    w1, wcat, w2, biases = packed
    B, S = x.shape

    # Batch tile: multiple of 8 sublanes, capped so activations fit VMEM
    # comfortably even on v7x (64 MiB physical / 32 MiB scoped default).
    bt = min(block_b, _round_up(B, 8))
    b_pad = _round_up(B, bt)
    if b_pad != B:
        # Padded rows produce junk outputs; they are sliced off below BEFORE
        # the global advantage mean, so they never contaminate the result.
        x = jnp.pad(x, ((0, b_pad - B), (0, 0)))

    out_pad = pl.pallas_call(
        dueling_dqn_kernel,
        out_shape=jax.ShapeDtypeStruct((b_pad, N_PAD), jnp.float32),
        grid=(b_pad // bt,),
        in_specs=[
            pl.BlockSpec((bt, S), lambda i: (i, 0)),         # x: one tile/step
            pl.BlockSpec(w1.shape, lambda i: (0, 0)),        # weights: VMEM-
            pl.BlockSpec(wcat.shape, lambda i: (0, 0)),      #   resident across
            pl.BlockSpec(w2.shape, lambda i: (0, 0)),        #   all batch tiles
            pl.BlockSpec(biases.shape, lambda i: (0, 0)),
        ],
        out_specs=pl.BlockSpec((bt, N_PAD), lambda i: (i, 0)),
        compiler_params=pltpu.CompilerParams(
            dimension_semantics=("parallel",)),              # megacore on v7x
    )(x, w1, wcat, w2, biases)

    # Global-mean combine (one tiny fused XLA elementwise); matches torch's
    # no-dim advantage.mean() over the whole (B, A) tensor.
    out = out_pad[:B]
    adv = out[:, :action_dim]                                # (B, A)
    value = out[:, action_dim:action_dim + 1]                # (B, 1)
    return value + adv - jnp.mean(adv)


def init_params(key, state_dim, action_dim):
    """Deterministic synthetic parameters (shapes match the PyTorch module)."""
    ks = jax.random.split(key, 10)

    def lin(kw, kb, fan_in, fan_out):
        bound = 1.0 / jnp.sqrt(fan_in)
        w = jax.random.uniform(kw, (fan_in, fan_out), jnp.float32, -bound, bound)
        b = jax.random.uniform(kb, (1, fan_out), jnp.float32, -bound, bound)
        return w, b

    w1, b1 = lin(ks[0], ks[1], state_dim, HIDDEN)
    wv1, bv1 = lin(ks[2], ks[3], HIDDEN, STREAM)
    wv2, bv2 = lin(ks[4], ks[5], STREAM, 1)
    wa1, ba1 = lin(ks[6], ks[7], HIDDEN, STREAM)
    wa2, ba2 = lin(ks[8], ks[9], STREAM, action_dim)
    return (w1, b1, wv1, bv1, wv2, bv2, wa1, ba1, wa2, ba2)


def reference_forward(x, params):
    """Plain-JAX f32 reference matching the PyTorch forward."""
    (w1, b1, wv1, bv1, wv2, bv2, wa1, ba1, wa2, ba2) = params
    h = jnp.maximum(x @ w1 + b1, 0.0)
    v = jnp.maximum(h @ wv1 + bv1, 0.0) @ wv2 + bv2
    a = jnp.maximum(h @ wa1 + ba1, 0.0) @ wa2 + ba2
    return v + a - jnp.mean(a)


if __name__ == "__main__":
    key = jax.random.PRNGKey(0)
    k_x, k_p = jax.random.split(key)

    batch = 2
    state_dim = 16
    action_dim = 8

    x = jax.random.normal(k_x, (batch, state_dim), dtype=jnp.float32)
    params = init_params(k_p, state_dim, action_dim)
    packed = pack_params(params, action_dim)

    fwd = jax.jit(functools.partial(dueling_dqn_forward, action_dim=action_dim))
    q = jax.block_until_ready(fwd(x, packed))

    q_ref = reference_forward(x, params)
    assert q.shape == (batch, action_dim)
    # bf16 MXU operands (f32 accumulate) => ~1e-2-level deltas vs the pure-f32
    # reference are expected; tolerance relaxed accordingly.
    assert jnp.allclose(q, q_ref, atol=2e-2, rtol=2e-2), (q, q_ref)

    print("KERNEL_OK")
</pallas_src>

<mosaic_0001>
module attributes {stable_mosaic.version = 11 : i64} {
  func.func @dueling_dqn_kernel(%arg0: i32, %arg1: memref<8x16xf32, #tpu.memory_space<vmem>>, %arg2: memref<16x256xbf16, #tpu.memory_space<vmem>>, %arg3: memref<256x256xbf16, #tpu.memory_space<vmem>>, %arg4: memref<256x128xbf16, #tpu.memory_space<vmem>>, %arg5: memref<3x256xf32, #tpu.memory_space<vmem>>, %arg6: memref<8x128xf32, #tpu.memory_space<vmem>>) attributes {dimension_semantics = [#tpu.dimension_semantics<parallel>], iteration_bounds = array<i64: 1>, scalar_prefetch = 0 : i64, scratch_operands = 0 : i64, tpu.core_type = #tpu.core_type<tc>, window_params = [{transform_indices = @transform_0, window_bounds = array<i64: 8, 16>}, {pipeline_mode = #tpu.pipeline_mode<synchronous>, transform_indices = @transform_1, window_bounds = array<i64: 16, 256>}, {pipeline_mode = #tpu.pipeline_mode<synchronous>, transform_indices = @transform_2, window_bounds = array<i64: 256, 256>}, {pipeline_mode = #tpu.pipeline_mode<synchronous>, transform_indices = @transform_3, window_bounds = array<i64: 256, 128>}, {pipeline_mode = #tpu.pipeline_mode<synchronous>, transform_indices = @transform_4, window_bounds = array<i64: 3, 256>}, {transform_indices = @transform_5, window_bounds = array<i64: 8, 128>}]} {
    %c0 = arith.constant 0 : index
    %c0_0 = arith.constant 0 : index
    %0 = vector.load %arg5[%c0, %c0_0] : memref<3x256xf32, #tpu.memory_space<vmem>>, vector<1x256xf32>
    %c1 = arith.constant 1 : index
    %c0_1 = arith.constant 0 : index
    %1 = vector.load %arg5[%c1, %c0_1] : memref<3x256xf32, #tpu.memory_space<vmem>>, vector<1x256xf32>
    %c2 = arith.constant 2 : index
    %c0_2 = arith.constant 0 : index
    %2 = vector.load %arg5[%c2, %c0_2] : memref<3x256xf32, #tpu.memory_space<vmem>>, vector<1x128xf32>
    %c0_3 = arith.constant 0 : index
    %c0_4 = arith.constant 0 : index
    %3 = vector.load %arg1[%c0_3, %c0_4] : memref<8x16xf32, #tpu.memory_space<vmem>>, vector<8x16xf32>
    %4 = arith.truncf %3 : vector<8x16xf32> to vector<8x16xbf16>
    %c0_5 = arith.constant 0 : index
    %c0_6 = arith.constant 0 : index
    %5 = vector.load %arg2[%c0_5, %c0_6] : memref<16x256xbf16, #tpu.memory_space<vmem>>, vector<16x256xbf16>
    %cst = arith.constant dense<0.000000e+00> : vector<8x256xf32>
    %6 = tpu.matmul %4, %5, %cst {dimension_numbers = #tpu.dot_dimension_numbers<[1], [0], [0], [1], [0, 0, 1, 1], [], []>} : vector<8x16xbf16>, vector<16x256xbf16>, vector<8x256xf32> -> vector<8x256xf32>
    %7 = vector.broadcast %0 : vector<1x256xf32> to vector<8x256xf32>
    %8 = arith.addf %6, %7 : vector<8x256xf32>
    %cst_7 = arith.constant 0.000000e+00 : f32
    %9 = vector.broadcast %cst_7 : f32 to vector<8x256xf32>
    %10 = arith.maximumf %8, %9 : vector<8x256xf32>
    %11 = arith.truncf %10 : vector<8x256xf32> to vector<8x256xbf16>
    %c0_8 = arith.constant 0 : index
    %c0_9 = arith.constant 0 : index
    %12 = vector.load %arg3[%c0_8, %c0_9] : memref<256x256xbf16, #tpu.memory_space<vmem>>, vector<256x256xbf16>
    %cst_10 = arith.constant dense<0.000000e+00> : vector<8x256xf32>
    %13 = tpu.matmul %11, %12, %cst_10 {dimension_numbers = #tpu.dot_dimension_numbers<[1], [0], [0], [1], [0, 0, 1, 1], [], []>} : vector<8x256xbf16>, vector<256x256xbf16>, vector<8x256xf32> -> vector<8x256xf32>
    %14 = vector.broadcast %1 : vector<1x256xf32> to vector<8x256xf32>
    %15 = arith.addf %13, %14 : vector<8x256xf32>
    %cst_11 = arith.constant 0.000000e+00 : f32
    %16 = vector.broadcast %cst_11 : f32 to vector<8x256xf32>
    %17 = arith.maximumf %15, %16 : vector<8x256xf32>
    %18 = arith.truncf %17 : vector<8x256xf32> to vector<8x256xbf16>
    %c0_12 = arith.constant 0 : index
    %c0_13 = arith.constant 0 : index
    %19 = vector.load %arg4[%c0_12, %c0_13] : memref<256x128xbf16, #tpu.memory_space<vmem>>, vector<256x128xbf16>
    %cst_14 = arith.constant dense<0.000000e+00> : vector<8x128xf32>
    %20 = tpu.matmul %18, %19, %cst_14 {dimension_numbers = #tpu.dot_dimension_numbers<[1], [0], [0], [1], [0, 0, 1, 1], [], []>} : vector<8x256xbf16>, vector<256x128xbf16>, vector<8x128xf32> -> vector<8x128xf32>
    %21 = vector.broadcast %2 : vector<1x128xf32> to vector<8x128xf32>
    %22 = arith.addf %20, %21 : vector<8x128xf32>
    %c0_15 = arith.constant 0 : index
    %c0_16 = arith.constant 0 : index
    %23 = vector.load %arg6[%c0_15, %c0_16] : memref<8x128xf32, #tpu.memory_space<vmem>>, vector<8x128xf32>
    tpu.vector_store %arg6[%c0_15, %c0_16], %22 {strides = array<i32>} : memref<8x128xf32, #tpu.memory_space<vmem>>, vector<8x128xf32>,
    return
  }
  func.func @transform_0(%arg0: i32) -> (i32, i32) {
    %c0_i32 = arith.constant 0 : i32
    %c0_i32_0 = arith.constant 0 : i32
    return %arg0, %c0_i32 : i32, i32
  }
  func.func @transform_1(%arg0: i32) -> (i32, i32) {
    %c0_i32 = arith.constant 0 : i32
    %c0_i32_0 = arith.constant 0 : i32
    %c0_i32_1 = arith.constant 0 : i32
    return %c0_i32, %c0_i32_0 : i32, i32
  }
  func.func @transform_2(%arg0: i32) -> (i32, i32) {
    %c0_i32 = arith.constant 0 : i32
    %c0_i32_0 = arith.constant 0 : i32
    %c0_i32_1 = arith.constant 0 : i32
    return %c0_i32, %c0_i32_0 : i32, i32
  }
  func.func @transform_3(%arg0: i32) -> (i32, i32) {
    %c0_i32 = arith.constant 0 : i32
    %c0_i32_0 = arith.constant 0 : i32
    %c0_i32_1 = arith.constant 0 : i32
    return %c0_i32, %c0_i32_0 : i32, i32
  }
  func.func @transform_4(%arg0: i32) -> (i32, i32) {
    %c0_i32 = arith.constant 0 : i32
    %c0_i32_0 = arith.constant 0 : i32
    %c0_i32_1 = arith.constant 0 : i32
    return %c0_i32, %c0_i32_0 : i32, i32
  }
  func.func @transform_5(%arg0: i32) -> (i32, i32) {
    %c0_i32 = arith.constant 0 : i32
    %c0_i32_0 = arith.constant 0 : i32
    return %arg0, %c0_i32 : i32, i32
  }
}

</mosaic_0001>

<bundles_post_ra>
// kernel: dueling_dqn_forward.1
= control target key start
LH: loop header
LB: loop body
LE: loop exit
PB: predicated region body
PF: predicated region fallthrough
CT: control target
= control target key end

     0   :  { %10 = vsyncpa [#allocation3], 0  ;;  %s883_s0 = inlined_call_operand.vmem [shape: f32[8,16], index: 0, kind: input, shape index: {}]   ;;  %s884_s1 = inlined_call_operand.hbm [shape: bf16[16,256], index: 1, kind: input, shape index: {}]   ;;  %s885_s2 = inlined_call_operand.hbm [shape: bf16[256,256], index: 2, kind: input, shape index: {}]   ;;  %s886_s3 = inlined_call_operand.hbm [shape: bf16[256,128], index: 3, kind: input, shape index: {}]   ;;  %s887_s4 = inlined_call_operand.vmem [shape: f32[3,256], index: 4, kind: input, shape index: {}]   ;;  %s888_s5 = inlined_call_operand.vmem [shape: f32[8,128], index: 5, kind: output, shape index: {}]  }
   0x1   :  { %11 = vsyncpa [#allocation5], 0  ;;  %s787_s18 = smov [#allocation4]   ;;  %s788_s20 = smov [#allocation2]  }
   0x2   :  { %s31_s19 = sshll.u32 %s787_s18, 4  ;;  %s19_s21 = sshll.u32 %s788_s20, 4  ;;  %s32_s19 = int_to_ptr.vmem [resolvable:$true] %s31_s19  ;;  %s825_s21 = int_to_ptr.vmem [resolvable:$true] %s19_s21 }
   0x3   :  { %s717_s24 = scalar_lea.hbm %s885_s2, 4096 }
   0x4   :  { %p718_p0 = scmp.ne.s32.totalorder %s885_s2, %s717_s24  ;;  %p721_p1 = scmp.lt.u32.totalorder %s717_s24, %s885_s2 }
   0x6   :  { %p723_p2 = pnand %p721_p1, %p718_p0 }
   0x8   :  { %726 = shalt.err (!%p723_p2)
}
   0x9   :  { %s727_s29 = scalar_lea.vmem %s32_s19, 4096  ;;  %p732_p4 = scmp.lt.s32.totalorder %s32_s19, %s32_s19 }
   0xa   :  { %p728_p3 = scmp.ne.s32.totalorder %s32_s19, %s727_s29  ;;  %p733_p5 = scmp.lt.s32.totalorder %s727_s29, %s727_s29 }
   0xc   :  { %p734_p6 = por %p733_p5, %p732_p4 }
   0xe   :  { %p735_p7 = pnand %p734_p6, %p728_p3 }
  0x10   :  { %738 = shalt.err (!%p735_p7)
}
  0x11   :  { %s789_s30 = smov 128   ;;  %s790_s6 = smov 8  }
  0x12   :  { %37 = dma.hbm_to_vmem [thread:$0]  %s885_s2, 4096, %s32_s19, [#allocation5], %s789_s30, %s789_s30, %s790_s6  }
  0x13   :  { %s739_s11 = scalar_lea.hbm %s884_s1, 256 }
  0x14   :  { %p740_p8 = scmp.ne.s32.totalorder %s884_s1, %s739_s11  ;;  %p743_p9 = scmp.lt.u32.totalorder %s739_s11, %s884_s1 }
  0x16   :  { %p745_p10 = pnand %p743_p9, %p740_p8 }
  0x18   :  { %748 = shalt.err (!%p745_p10)
}
  0x19   :  { %s749_s16 = scalar_lea.vmem %s825_s21, 256  ;;  %p754_p12 = scmp.lt.s32.totalorder %s825_s21, %s825_s21 }
  0x1a   :  { %p750_p11 = scmp.ne.s32.totalorder %s825_s21, %s749_s16  ;;  %p755_p13 = scmp.lt.s32.totalorder %s749_s16, %s749_s16 }
  0x1c   :  { %p756_p0 = por %p755_p13, %p754_p12 }
  0x1e   :  { %p757_p1 = pnand %p756_p0, %p750_p11 }
  0x20   :  { %760 = shalt.err (!%p757_p1)
}
  0x21   :  { %25 = dma.hbm_to_vmem [thread:$0]  %s884_s1, 256, %s825_s21, [#allocation3], %s789_s30, %s789_s30, %s790_s6  }
  0x22   :  { %s791_s18 = smov [#allocation6]   ;;  %s761_s23 = scalar_lea.hbm %s886_s3, 2048 }
  0x23   :  { %s43_s19 = sshll.u32 %s791_s18, 4  ;;  %p762_p2 = scmp.ne.s32.totalorder %s886_s3, %s761_s23  ;;  %s44_s19 = int_to_ptr.vmem [resolvable:$true] %s43_s19 }
  0x24   :  { %p765_p3 = scmp.lt.u32.totalorder %s761_s23, %s886_s3 }
  0x26   :  { %p767_p4 = pnand %p765_p3, %p762_p2 }
  0x28   :  { %770 = shalt.err (!%p767_p4)
}
  0x29   :  { %s771_s28 = scalar_lea.vmem %s44_s19, 2048  ;;  %p776_p6 = scmp.lt.s32.totalorder %s44_s19, %s44_s19 }
  0x2a   :  { %p772_p5 = scmp.ne.s32.totalorder %s44_s19, %s771_s28  ;;  %p777_p7 = scmp.lt.s32.totalorder %s771_s28, %s771_s28 }
  0x2c   :  { %p778_p8 = por %p777_p7, %p776_p6 }
  0x2e   :  { %p779_p9 = pnand %p778_p8, %p772_p5 }
  0x30   :  { %782 = shalt.err (!%p779_p9)
}
  0x31   :  { %s792_s1 = smov 64   ;;  %s793_s21 = smov 4  }
  0x32   :  { %49 = dma.hbm_to_vmem [thread:$0]  %s886_s3, 2048, %s44_s19, [#allocation5], %s792_s1, %s792_s1, %s793_s21  }
  0x33   :  { %783 = dma.done.wait [#allocation3], 256  }
  0x34   :  { %784 = vsyncadd [#allocation3], 4294967040 }
  0x35   :  { %785 = dma.done.wait [#allocation5], 6144  }
  0x36   :  { %786 = vsyncadd [#allocation5], 4294961152  ;;  %v794_v0 = vmov 0   ;;  %v650_v1 = vld [vmem:[#allocation2 + $0x4] ss:$8 sps:$4 sm:$0xff]   ;;  %v66_v3 = vld [vmem:[%s883_s0] sm:$0xff]  ;;  %v71_v49 = vlaneseq }
  0x37   :  { %127 = vmatprep.mubr.bf16.mxu0 %v794_v0  ;;  %v652_v2 = vld [vmem:[#allocation2] ss:$8 sps:$4 sm:$0xff]   ;;  %95 = vmatprep.subr.bf16.mxu0 %v650_v1  ;;  %v67_v4 = vpack.c.bf16 %v66_v3, %v66_v3  ;;  %v653_v5 = vld [vmem:[#allocation4 + $0x4] ss:$8 sps:$4 sm:$0xff]   ;;  %v655_v6 = vld [vmem:[#allocation4] ss:$8 sps:$4 sm:$0xff]  }
  0x38   :  { %96 = vmatpush1.bf16.msra.mxu0 %v652_v2  ;;  %vm91_vm0 = vcmask 130048   ;;  %v656_v7 = vld [vmem:[#allocation4 + $0x14] ss:$8 sps:$4 sm:$0xff]   ;;  %343 = vmatprep.subr.bf16.mxu1 %v653_v5  ;;  %v658_v8 = vld [vmem:[#allocation4 + $0x10] ss:$8 sps:$4 sm:$0xff]   ;;  %v701_v37 = vld [vmem:[#allocation6 + $0x40] sm:$0xff]  }
  0x39   :  { %344 = vmatpush1.bf16.msra.mxu1 %v655_v6  ;;  %v659_v9 = vld [vmem:[#allocation4 + $0x24] ss:$8 sps:$4 sm:$0xff]   ;;  %v661_v10 = vld [vmem:[#allocation4 + $0x20] ss:$8 sps:$4 sm:$0xff]   ;;  %v662_v11 = vld [vmem:[#allocation4 + $0x34] ss:$8 sps:$4 sm:$0xff]   ;;  %620 = vmatprep.subr.bf16.mxu0 %v701_v37 }
  0x3a   :  { %345 = vmatprep.subr.bf16.mxu1 %v656_v7  ;;  %v664_v12 = vld [vmem:[#allocation4 + $0x30] ss:$8 sps:$4 sm:$0xff]   ;;  %v665_v13 = vld [vmem:[#allocation4 + $0x44] ss:$8 sps:$4 sm:$0xff]   ;;  %v667_v14 = vld [vmem:[#allocation4 + $0x40] ss:$8 sps:$4 sm:$0xff]  }
  0x3b   :  { %570 = vmatmul.mubr.msk.bf16.vlgmr.msra.gmra.mrb[0].mxu0 %vm91_vm0, %v67_v4  ;;  %v668_v15 = vld [vmem:[#allocation4 + $0x54] ss:$8 sps:$4 sm:$0xff]   ;;  %v670_v16 = vld [vmem:[#allocation4 + $0x50] ss:$8 sps:$4 sm:$0xff]   ;;  %v671_v17 = vld [vmem:[#allocation4 + $0x64] ss:$8 sps:$4 sm:$0xff]  }
  0x3c   :  { %v673_v18 = vld [vmem:[#allocation4 + $0x60] ss:$8 sps:$4 sm:$0xff]   ;;  %v674_v19 = vld [vmem:[#allocation4 + $0x74] ss:$8 sps:$4 sm:$0xff]   ;;  %v676_v20 = vld [vmem:[#allocation4 + $0x70] ss:$8 sps:$4 sm:$0xff]  }
  0x3d   :  { %346 = vmatpush1.bf16.msra.mxu1 %v658_v8  ;;  %v677_v21 = vld [vmem:[#allocation4 + $0x84] ss:$8 sps:$4 sm:$0xff]   ;;  %v679_v22 = vld [vmem:[#allocation4 + $0x80] ss:$8 sps:$4 sm:$0xff]   ;;  %v680_v23 = vld [vmem:[#allocation4 + $0x94] ss:$8 sps:$4 sm:$0xff]  }
  0x3e   :  { %347 = vmatprep.subr.bf16.mxu1 %v659_v9  ;;  %v682_v24 = vld [vmem:[#allocation4 + $0x90] ss:$8 sps:$4 sm:$0xff]   ;;  %v683_v25 = vld [vmem:[#allocation4 + $0xa4] ss:$8 sps:$4 sm:$0xff]   ;;  %v685_v26 = vld [vmem:[#allocation4 + $0xa0] ss:$8 sps:$4 sm:$0xff]  }
  0x3f   :  { %v686_v27 = vld [vmem:[#allocation4 + $0xb4] ss:$8 sps:$4 sm:$0xff]   ;;  %v688_v28 = vld [vmem:[#allocation4 + $0xb0] ss:$8 sps:$4 sm:$0xff]   ;;  %v689_v29 = vld [vmem:[#allocation4 + $0xc4] ss:$8 sps:$4 sm:$0xff]  }
  0x40   :  { %v691_v30 = vld [vmem:[#allocation4 + $0xc0] ss:$8 sps:$4 sm:$0xff]   ;;  %v692_v31 = vld [vmem:[#allocation4 + $0xd4] ss:$8 sps:$4 sm:$0xff]   ;;  %v694_v32 = vld [vmem:[#allocation4 + $0xd0] ss:$8 sps:$4 sm:$0xff]  }
  0x41   :  { %348 = vmatpush1.bf16.msra.mxu1 %v661_v10  ;;  %v695_v33 = vld [vmem:[#allocation4 + $0xe4] ss:$8 sps:$4 sm:$0xff]   ;;  %v697_v34 = vld [vmem:[#allocation4 + $0xe0] ss:$8 sps:$4 sm:$0xff]   ;;  %v698_v35 = vld [vmem:[#allocation4 + $0xf4] ss:$8 sps:$4 sm:$0xff]  }
  0x42   :  { %349 = vmatprep.subr.bf16.mxu1 %v662_v11  ;;  %v700_v36 = vld [vmem:[#allocation4 + $0xf0] ss:$8 sps:$4 sm:$0xff]   ;;  %v702_v38 = vld [vmem:[#allocation6] sm:$0xff]   ;;  %v703_v39 = vld [vmem:[#allocation6 + $0x48] sm:$0xff]   ;;  %v72_v50 = vshrl.u32 %v71_v49, 7 }
  0x43   :  { %621 = vmatpush3.bf16.msra.mxu0 %v702_v38  ;;  %v704_v40 = vld [vmem:[#allocation6 + $0x8] sm:$0xff]   ;;  %v705_v41 = vld [vmem:[#allocation6 + $0x50] sm:$0xff]   ;;  %v707_v43 = vld [vmem:[#allocation6 + $0x58] sm:$0xff]  }
  0x44   :  { %622 = vmatprep.subr.bf16.mxu0 %v703_v39  ;;  %v706_v42 = vld [vmem:[#allocation6 + $0x10] sm:$0xff]   ;;  %v708_v44 = vld [vmem:[#allocation6 + $0x18] sm:$0xff]   ;;  %v709_v45 = vld [vmem:[#allocation6 + $0x60] sm:$0xff]   ;;  %v73_v51 = vsub.s32 0, %v72_v50  ;;  %v77_v53 = vsub.s32 1, %v72_v50 }
  0x45   :  { %350 = vmatpush1.bf16.msra.mxu1 %v664_v12  ;;  %v710_v46 = vld [vmem:[#allocation6 + $0x20] sm:$0xff]   ;;  %v711_v47 = vld [vmem:[#allocation6 + $0x68] sm:$0xff]   ;;  %v713_v2 = vld [vmem:[#allocation6 + $0x70] sm:$0xff]  }
  0x46   :  { %351 = vmatprep.subr.bf16.mxu1 %v665_v13  ;;  %v712_v48 = vld [vmem:[#allocation6 + $0x28] sm:$0xff]   ;;  %v714_v3 = vld [vmem:[#allocation6 + $0x30] sm:$0xff]   ;;  %v715_v4 = vld [vmem:[#allocation6 + $0x78] sm:$0xff]  }
  0x47   :  { %623 = vmatpush3.bf16.msra.mxu0 %v704_v40  ;;  %v62_v52 = vld [vmem:[%s887_s4] ss:$4 sm:$0x3]  ;;  %v716_v5 = vld [vmem:[#allocation6 + $0x38] sm:$0xff]  }
  0x48   :  { %624 = vmatprep.subr.bf16.mxu0 %v705_v41  ;;  %v74_v54 = vrot.slane %v62_v52, %v73_v51  ;;  %v78_v55 = vrot.slane %v62_v52, %v77_v53  ;;  %v567_v6 = vld [vmem:[%s887_s4 + $0x1] ss:$4 sm:$0x3] }
  0x49   :  { %352 = vmatpush1.bf16.msra.mxu1 %v667_v14  ;;  %v176_v7 = vrot.slane %v567_v6, %v73_v51  ;;  %v180_v8 = vrot.slane %v567_v6, %v77_v53 }
  0x4a   :  { %353 = vmatprep.subr.bf16.mxu1 %v668_v15 }
  0x4b   :  { %625 = vmatpush3.bf16.msra.mxu0 %v706_v42 }
  0x4c   :  { %626 = vmatprep.subr.bf16.mxu0 %v707_v43 }
  0x4d   :  { %354 = vmatpush1.bf16.msra.mxu1 %v670_v16 }
  0x4e   :  { %355 = vmatprep.subr.bf16.mxu1 %v671_v17 }
  0x4f   :  { %627 = vmatpush3.bf16.msra.mxu0 %v708_v44 }
  0x50   :  { %628 = vmatprep.subr.bf16.mxu0 %v709_v45 }
  0x51   :  { %356 = vmatpush1.bf16.msra.mxu1 %v673_v18 }
  0x52   :  { %357 = vmatprep.subr.bf16.mxu1 %v674_v19 }
  0x53   :  { %629 = vmatpush3.bf16.msra.mxu0 %v710_v46 }
  0x54   :  { %630 = vmatprep.subr.bf16.mxu0 %v711_v47 }
  0x55   :  { %358 = vmatpush1.bf16.msra.mxu1 %v676_v20  ;;  %v603_v20 = vld [vmem:[%s887_s4 + $0x2] ss:$0 sm:$0xff] }
  0x56   :  { %359 = vmatprep.subr.bf16.mxu1 %v677_v21 }
  0x57   :  { %631 = vmatpush3.bf16.msra.mxu0 %v712_v48 }
  0x58   :  { %632 = vmatprep.subr.bf16.mxu0 %v713_v2 }
  0x59   :  { %360 = vmatpush1.bf16.msra.mxu1 %v679_v22 }
  0x5a   :  { %361 = vmatprep.subr.bf16.mxu1 %v680_v23 }
  0x5b   :  { %633 = vmatpush3.bf16.msra.mxu0 %v714_v3 }
  0x5c   :  { %634 = vmatprep.subr.bf16.mxu0 %v715_v4 }
  0x5d   :  { %362 = vmatpush1.bf16.msra.mxu1 %v682_v24 }
  0x5e   :  { %363 = vmatprep.subr.bf16.mxu1 %v683_v25 }
  0x5f   :  { %635 = vmatpush3.bf16.msra.mxu0 %v716_v5 }
  0x61   :  { %364 = vmatpush1.bf16.msra.mxu1 %v685_v26 }
  0x62   :  { %365 = vmatprep.subr.bf16.mxu1 %v686_v27 }
  0x65   :  { %366 = vmatpush1.bf16.msra.mxu1 %v688_v28 }
  0x66   :  { %367 = vmatprep.subr.bf16.mxu1 %v689_v29 }
  0x69   :  { %368 = vmatpush1.bf16.msra.mxu1 %v691_v30 }
  0x6a   :  { %369 = vmatprep.subr.bf16.mxu1 %v692_v31 }
  0x6d   :  { %370 = vmatpush1.bf16.msra.mxu1 %v694_v32 }
  0x6e   :  { %371 = vmatprep.subr.bf16.mxu1 %v695_v33 }
  0x71   :  { %372 = vmatpush1.bf16.msra.mxu1 %v697_v34 }
  0x72   :  { %373 = vmatprep.subr.bf16.mxu1 %v698_v35 }
  0x75   :  { %374 = vmatpush1.bf16.msra.mxu1 %v700_v36 }
 0x10e   :  { %v129_v56 = vpop.f32.mrb[0].mxu0 }
 0x10f   :  { %v130_v57 = vadd.f32 %v129_v56, %v74_v54  ;;  %v131_v58 = vpop.f32.mrb[1].mxu0 }
 0x110   :  { %v132_v59 = vadd.f32 %v131_v58, %v78_v55  ;;  %v133_v60 = vpop.f32.mrb[2].mxu0 }
 0x111   :  { %v136_v61 = vmax.f32 %v130_v57, 0.0  ;;  %v134_v62 = vpop.f32.mrb[3].mxu0 }
 0x112   :  { %v137_v63 = vmax.f32 %v132_v59, 0.0 }
 0x113   :  { %v138_v1 = vpack.c.bf16 %v136_v61, %v136_v61 }
 0x114   :  { %v139_v0 = vpack.c.bf16 %v137_v63, %v137_v63 }
 0x116   :  { %375 = vmatprep.mubr.bf16.mxu1 %v139_v0 }
 0x117   :  { %376 = vmatmul.mubr.bf16.vlgmr.msra.gmra.mrb[0].mxu1 %v138_v1 }
 0x1ea   :  { %v377_v9 = vpop.f32.mrb[0].mxu1 }
 0x1eb   :  { %v378_v10 = vadd.f32 %v377_v9, %v176_v7  ;;  %v379_v11 = vpop.f32.mrb[1].mxu1 }
 0x1ec   :  { %v380_v12 = vadd.f32 %v379_v11, %v180_v8  ;;  %v381_v13 = vpop.f32.mrb[2].mxu1 }
 0x1ed   :  { %v384_v14 = vmax.f32 %v378_v10, 0.0  ;;  %v382_v15 = vpop.f32.mrb[3].mxu1 }
 0x1ee   :  { %v385_v16 = vmax.f32 %v380_v12, 0.0 }
 0x1ef   :  { %v386_v18 = vpack.c.bf16 %v384_v14, %v384_v14 }
 0x1f0   :  { %v387_v17 = vpack.c.bf16 %v385_v16, %v385_v16 }
 0x1f2   :  { %552 = vmatprep.mubr.bf16.mxu0 %v387_v17 }
 0x1f3   :  { %553 = vmatmul.mubr.bf16.vlgmr.msra.gmra.mrb[4].mxu0 %v386_v18 }
 0x2c6   :  { %v636_v19 = vpop.f32.mrb[4].mxu0 }
 0x2c7   :  { %v637_v21 = vpop.f32.mrb[5].mxu0 }
 0x2c8   :  { %v638_v22 = vadd.f32 %v637_v21, %v636_v19  ;;  %v639_v23 = vpop.f32.mrb[6].mxu0 }
 0x2c9   :  { %v640_v24 = vpop.f32.mrb[7].mxu0 }
 0x2ca   :  { %v555_v25 = vadd.f32 %v638_v22, %v603_v20 }
 0x2cc   :  { %560 = vst [vmem:[%s888_s5] sm:$0xff] %v555_v25 }
 0x2cd   :  { %565 = vsyncpa [#allocation3], 1 }
 0x2ce   :  { %566 = vsyncpa [#allocation5], 1 }

</bundles_post_ra>
